<compile_context>
chip_gen: v7x
topology: tpu7x:2x2x1
jax: 0.10.0
libtpu: 0.0.40
codegen_flags: <defaults>
</compile_context>

<pallas_src>
import math

import jax
import jax.numpy as jnp
from jax.experimental import pallas as pl
from jax.experimental.pallas import tpu as pltpu


# ------------------------------- constants -----------------------------------

_H1 = 128          # 64  -> padded to one full lane tile
_H2 = 128          # 32  -> padded to one full lane tile
_TILE_B_MAX = 4096                 # rows of x per grid step
_VMEM_X_BUDGET = 16 * 1024 * 1024  # bytes allowed for the double-buffered x tile


def _round_up(x, m):
    return ((x + m - 1) // m) * m


def _pad_to(a, rows, cols):
    return jnp.pad(a, ((0, rows - a.shape[0]), (0, cols - a.shape[1])))


def _pick_tile_b(batch, n_state, itemsize):
    """Largest batch tile that amortizes grid overhead, keeps >=2 grid steps
    when B allows it (v7x megacore), and fits the VMEM x double-buffer."""
    t = _round_up(max(1, (batch + 1) // 2), 8)   # ~half the batch per step
    t = min(t, _TILE_B_MAX)
    per_row = max(1, n_state) * itemsize
    t_vmem = max(8, (_VMEM_X_BUDGET // (2 * per_row)) // 8 * 8)
    return max(8, min(t, t_vmem))


# ----------------------------- Pallas kernel ---------------------------------

def _critic_kernel(x_ref, w1_ref, b1_ref, w2_ref, b2_ref, w3_ref, b3_ref,
                   o_ref):
    """Fused MLP on one batch tile: relu(relu(x@W1+b1)@W2+b2)@W3+b3."""
    x = x_ref[...].astype(jnp.float32)          # no-op for f32, upcast for bf16

    h1 = jnp.dot(x, w1_ref[...], preferred_element_type=jnp.float32)
    h1 = jnp.maximum(h1 + b1_ref[...], 0.0)     # ReLU

    h2 = jnp.dot(h1, w2_ref[...], preferred_element_type=jnp.float32)
    h2 = jnp.maximum(h2 + b2_ref[...], 0.0)     # ReLU

    v = jnp.dot(h2, w3_ref[...], preferred_element_type=jnp.float32)
    o_ref[...] = (v + b3_ref[...]).astype(o_ref.dtype)   # (tile_b, 1) writeback


# ------------------------------- wrapper -------------------------------------

def critic_forward(state, params, *, stream_dtype=None):
    """CriticNet forward pass.

    state : [B, n_state] float32
    params: dict with w1[n_state,64], b1[1,64], w2[64,32], b2[1,32],
            w3[32,1], b3[1,1]   (stored [in, out]; y = x @ W + b)
    stream_dtype: optional narrower dtype (e.g. jnp.bfloat16) used only to
            stream x from HBM; accumulation stays f32.
    returns: [B, 1] float32 state values
    """
    B, n_state = state.shape

    # Hidden dims zero-padded to 128 (exact: padded activations are ReLU(0)=0
    # and meet zero weight rows). x / W1-rows / value head keep true sizes.
    w1 = _pad_to(params["w1"].astype(jnp.float32), n_state, _H1)
    b1 = _pad_to(params["b1"].astype(jnp.float32), 1, _H1)
    w2 = _pad_to(params["w2"].astype(jnp.float32), _H1, _H2)
    b2 = _pad_to(params["b2"].astype(jnp.float32), 1, _H2)
    w3 = _pad_to(params["w3"].astype(jnp.float32), _H2, 1)
    b3 = params["b3"].astype(jnp.float32).reshape(1, 1)

    x = state if stream_dtype is None else state.astype(stream_dtype)

    tile_b = _pick_tile_b(B, n_state, jnp.dtype(x.dtype).itemsize)
    grid = (pl.cdiv(B, tile_b),)    # ragged last block handled by Pallas

    out = pl.pallas_call(
        _critic_kernel,
        out_shape=jax.ShapeDtypeStruct((B, 1), jnp.float32),
        grid=grid,
        in_specs=[
            # state tile: streamed (double-buffered) along the batch grid;
            # feature dim is a full-extent block -> no lane padding needed.
            pl.BlockSpec((tile_b, n_state), lambda i: (i, 0)),
            # weights / biases: constant block index -> fetched once, resident.
            pl.BlockSpec((n_state, _H1), lambda i: (0, 0)),
            pl.BlockSpec((1, _H1), lambda i: (0, 0)),
            pl.BlockSpec((_H1, _H2), lambda i: (0, 0)),
            pl.BlockSpec((1, _H2), lambda i: (0, 0)),
            pl.BlockSpec((_H2, 1), lambda i: (0, 0)),
            pl.BlockSpec((1, 1), lambda i: (0, 0)),
        ],
        out_specs=pl.BlockSpec((tile_b, 1), lambda i: (i, 0)),
        compiler_params=pltpu.CompilerParams(
            dimension_semantics=("parallel",),
            vmem_limit_bytes=32 * 1024 * 1024,   # safe on v5e/v6e/v7x
        ),
    )(x, w1, b1, w2, b2, w3, b3)

    return out


# -------------------------- parameter construction ---------------------------

def init_critic_params(key, n_state):
    """Deterministic init mimicking nn.Linear default U(-1/sqrt(fan_in), +)."""
    sizes = [(n_state, 64), (64, 32), (32, 1)]
    params = {}
    for i, (fan_in, fan_out) in enumerate(sizes, start=1):
        key, kw, kb = jax.random.split(key, 3)
        bound = 1.0 / math.sqrt(fan_in)
        params[f"w{i}"] = jax.random.uniform(
            kw, (fan_in, fan_out), jnp.float32, -bound, bound)
        params[f"b{i}"] = jax.random.uniform(
            kb, (1, fan_out), jnp.float32, -bound, bound)
    return params


# ---------------------------------- main -------------------------------------

if __name__ == "__main__":
    key = jax.random.PRNGKey(0)
    n_state = 32       # small synthetic state dimension
    batch = 8

    k_params, k_state = jax.random.split(key)
    params = init_critic_params(k_params, n_state)
    state = jax.random.normal(k_state, (batch, n_state), jnp.float32)

    values = jax.block_until_ready(critic_forward(state, params))

    # Pure-JAX reference (highest-precision matmuls; same math, no padding).
    hp = jax.lax.Precision.HIGHEST
    h1 = jnp.maximum(jnp.dot(state, params["w1"], precision=hp) + params["b1"], 0.0)
    h2 = jnp.maximum(jnp.dot(h1, params["w2"], precision=hp) + params["b2"], 0.0)
    ref = jnp.dot(h2, params["w3"], precision=hp) + params["b3"]

    assert values.shape == (batch, 1)
    assert jnp.allclose(values, ref, atol=1e-4, rtol=1e-4), float(
        jnp.max(jnp.abs(values - ref)))

    print("KERNEL_OK")
</pallas_src>

<mosaic_0001>
module attributes {stable_mosaic.version = 11 : i64} {
  func.func @_critic_kernel(%arg0: i32, %arg1: memref<8x32xf32, #tpu.memory_space<vmem>>, %arg2: memref<32x128xf32, #tpu.memory_space<vmem>>, %arg3: memref<1x128xf32, #tpu.memory_space<vmem>>, %arg4: memref<128x128xf32, #tpu.memory_space<vmem>>, %arg5: memref<1x128xf32, #tpu.memory_space<vmem>>, %arg6: memref<128x1xf32, #tpu.memory_space<vmem>>, %arg7: memref<1x1xf32, #tpu.memory_space<vmem>>, %arg8: memref<8x1xf32, #tpu.memory_space<vmem>>) attributes {dimension_semantics = [#tpu.dimension_semantics<parallel>], iteration_bounds = array<i64: 1>, scalar_prefetch = 0 : i64, scratch_operands = 0 : i64, tpu.core_type = #tpu.core_type<tc>, window_params = [{transform_indices = @transform_0, window_bounds = array<i64: 8, 32>}, {pipeline_mode = #tpu.pipeline_mode<synchronous>, transform_indices = @transform_1, window_bounds = array<i64: 32, 128>}, {pipeline_mode = #tpu.pipeline_mode<synchronous>, transform_indices = @transform_2, window_bounds = array<i64: 1, 128>}, {pipeline_mode = #tpu.pipeline_mode<synchronous>, transform_indices = @transform_3, window_bounds = array<i64: 128, 128>}, {pipeline_mode = #tpu.pipeline_mode<synchronous>, transform_indices = @transform_4, window_bounds = array<i64: 1, 128>}, {pipeline_mode = #tpu.pipeline_mode<synchronous>, transform_indices = @transform_5, window_bounds = array<i64: 128, 1>}, {pipeline_mode = #tpu.pipeline_mode<synchronous>, transform_indices = @transform_6, window_bounds = array<i64: 1, 1>}, {transform_indices = @transform_7, window_bounds = array<i64: 8, 1>}]} {
    %c0 = arith.constant 0 : index
    %c0_0 = arith.constant 0 : index
    %0 = vector.load %arg1[%c0, %c0_0] : memref<8x32xf32, #tpu.memory_space<vmem>>, vector<8x32xf32>
    %c0_1 = arith.constant 0 : index
    %c0_2 = arith.constant 0 : index
    %1 = vector.load %arg2[%c0_1, %c0_2] : memref<32x128xf32, #tpu.memory_space<vmem>>, vector<32x128xf32>
    %cst = arith.constant dense<0.000000e+00> : vector<8x128xf32>
    %2 = tpu.matmul %0, %1, %cst {dimension_numbers = #tpu.dot_dimension_numbers<[1], [0], [0], [1], [0, 0, 1, 1], [], []>} : vector<8x32xf32>, vector<32x128xf32>, vector<8x128xf32> -> vector<8x128xf32>
    %c0_3 = arith.constant 0 : index
    %c0_4 = arith.constant 0 : index
    %3 = vector.load %arg3[%c0_3, %c0_4] : memref<1x128xf32, #tpu.memory_space<vmem>>, vector<1x128xf32>
    %4 = vector.broadcast %3 : vector<1x128xf32> to vector<8x128xf32>
    %5 = arith.addf %2, %4 : vector<8x128xf32>
    %cst_5 = arith.constant 0.000000e+00 : f32
    %6 = vector.broadcast %cst_5 : f32 to vector<8x128xf32>
    %7 = arith.maximumf %5, %6 : vector<8x128xf32>
    %c0_6 = arith.constant 0 : index
    %c0_7 = arith.constant 0 : index
    %8 = vector.load %arg4[%c0_6, %c0_7] : memref<128x128xf32, #tpu.memory_space<vmem>>, vector<128x128xf32>
    %cst_8 = arith.constant dense<0.000000e+00> : vector<8x128xf32>
    %9 = tpu.matmul %7, %8, %cst_8 {dimension_numbers = #tpu.dot_dimension_numbers<[1], [0], [0], [1], [0, 0, 1, 1], [], []>} : vector<8x128xf32>, vector<128x128xf32>, vector<8x128xf32> -> vector<8x128xf32>
    %c0_9 = arith.constant 0 : index
    %c0_10 = arith.constant 0 : index
    %10 = vector.load %arg5[%c0_9, %c0_10] : memref<1x128xf32, #tpu.memory_space<vmem>>, vector<1x128xf32>
    %11 = vector.broadcast %10 : vector<1x128xf32> to vector<8x128xf32>
    %12 = arith.addf %9, %11 : vector<8x128xf32>
    %cst_11 = arith.constant 0.000000e+00 : f32
    %13 = vector.broadcast %cst_11 : f32 to vector<8x128xf32>
    %14 = arith.maximumf %12, %13 : vector<8x128xf32>
    %c0_12 = arith.constant 0 : index
    %c0_13 = arith.constant 0 : index
    %15 = vector.load %arg6[%c0_12, %c0_13] : memref<128x1xf32, #tpu.memory_space<vmem>>, vector<128x1xf32>
    %cst_14 = arith.constant dense<0.000000e+00> : vector<8x1xf32>
    %16 = tpu.matmul %14, %15, %cst_14 {dimension_numbers = #tpu.dot_dimension_numbers<[1], [0], [0], [1], [0, 0, 1, 1], [], []>} : vector<8x128xf32>, vector<128x1xf32>, vector<8x1xf32> -> vector<8x1xf32>
    %c0_15 = arith.constant 0 : index
    %c0_16 = arith.constant 0 : index
    %17 = vector.load %arg7[%c0_15, %c0_16] : memref<1x1xf32, #tpu.memory_space<vmem>>, vector<1x1xf32>
    %18 = vector.broadcast %17 : vector<1x1xf32> to vector<8x1xf32>
    %19 = arith.addf %16, %18 : vector<8x1xf32>
    %c0_17 = arith.constant 0 : index
    %c0_18 = arith.constant 0 : index
    %20 = vector.load %arg8[%c0_17, %c0_18] : memref<8x1xf32, #tpu.memory_space<vmem>>, vector<8x1xf32>
    tpu.vector_store %arg8[%c0_17, %c0_18], %19 {strides = array<i32>} : memref<8x1xf32, #tpu.memory_space<vmem>>, vector<8x1xf32>,
    return
  }
  func.func @transform_0(%arg0: i32) -> (i32, i32) {
    %c0_i32 = arith.constant 0 : i32
    %c0_i32_0 = arith.constant 0 : i32
    return %arg0, %c0_i32 : i32, i32
  }
  func.func @transform_1(%arg0: i32) -> (i32, i32) {
    %c0_i32 = arith.constant 0 : i32
    %c0_i32_0 = arith.constant 0 : i32
    %c0_i32_1 = arith.constant 0 : i32
    return %c0_i32, %c0_i32_0 : i32, i32
  }
  func.func @transform_2(%arg0: i32) -> (i32, i32) {
    %c0_i32 = arith.constant 0 : i32
    %c0_i32_0 = arith.constant 0 : i32
    %c0_i32_1 = arith.constant 0 : i32
    return %c0_i32, %c0_i32_0 : i32, i32
  }
  func.func @transform_3(%arg0: i32) -> (i32, i32) {
    %c0_i32 = arith.constant 0 : i32
    %c0_i32_0 = arith.constant 0 : i32
    %c0_i32_1 = arith.constant 0 : i32
    return %c0_i32, %c0_i32_0 : i32, i32
  }
  func.func @transform_4(%arg0: i32) -> (i32, i32) {
    %c0_i32 = arith.constant 0 : i32
    %c0_i32_0 = arith.constant 0 : i32
    %c0_i32_1 = arith.constant 0 : i32
    return %c0_i32, %c0_i32_0 : i32, i32
  }
  func.func @transform_5(%arg0: i32) -> (i32, i32) {
    %c0_i32 = arith.constant 0 : i32
    %c0_i32_0 = arith.constant 0 : i32
    %c0_i32_1 = arith.constant 0 : i32
    return %c0_i32, %c0_i32_0 : i32, i32
  }
  func.func @transform_6(%arg0: i32) -> (i32, i32) {
    %c0_i32 = arith.constant 0 : i32
    %c0_i32_0 = arith.constant 0 : i32
    %c0_i32_1 = arith.constant 0 : i32
    return %c0_i32, %c0_i32_0 : i32, i32
  }
  func.func @transform_7(%arg0: i32) -> (i32, i32) {
    %c0_i32 = arith.constant 0 : i32
    %c0_i32_0 = arith.constant 0 : i32
    return %arg0, %c0_i32 : i32, i32
  }
}

</mosaic_0001>

<bundles_post_ra>
// kernel: tpu_custom_call.1
= control target key start
LH: loop header
LB: loop body
LE: loop exit
PB: predicated region body
PF: predicated region fallthrough
CT: control target
= control target key end

     0   :  { %s721_s0 = inlined_call_operand.vmem [shape: f32[8,32], index: 0, kind: input, shape index: {}]   ;;  %s722_s1 = inlined_call_operand.hbm [shape: f32[32,128], index: 1, kind: input, shape index: {}]   ;;  %s723_s2 = inlined_call_operand.vmem [shape: f32[1,128], index: 2, kind: input, shape index: {}]   ;;  %s724_s3 = inlined_call_operand.vmem [shape: f32[128,128], index: 3, kind: input, shape index: {}]   ;;  %s725_s4 = inlined_call_operand.vmem [shape: f32[1,128], index: 4, kind: input, shape index: {}]   ;;  %s726_s5 = inlined_call_operand.vmem [shape: f32[128,1], index: 5, kind: input, shape index: {}]   ;;  %s727_s6 = inlined_call_operand.<no memory space> [shape: f32[1,1], index: 6, kind: input, shape index: {}]   ;;  %s728_s7 = inlined_call_operand.vmem [shape: f32[8,1], index: 7, kind: output, shape index: {}]  }
   0x1   :  { %v12_v0 = vstv %s727_s6 }
   0x2   :  { %13 = vst [vmem:[#allocation2] sm:$0x1] %v12_v0 }
   0x3   :  { %14 = vsyncpa [#allocation4], 0  ;;  %s531_s26 = smov [#allocation3]   ;;  %s507_s30 = scalar_lea.hbm %s722_s1, 512 }
   0x4   :  { %s22_s27 = sshll.u32 %s531_s26, 4  ;;  %p508_p0 = scmp.ne.s32.totalorder %s722_s1, %s507_s30  ;;  %s23_s27 = int_to_ptr.vmem [resolvable:$true] %s22_s27 }
   0x5   :  { %p511_p1 = scmp.lt.u32.totalorder %s507_s30, %s722_s1 }
   0x7   :  { %p513_p2 = pnand %p511_p1, %p508_p0 }
   0x9   :  { %516 = shalt.err (!%p513_p2)
}
   0xa   :  { %s517_s6 = scalar_lea.vmem %s23_s27, 512  ;;  %p522_p4 = scmp.lt.s32.totalorder %s23_s27, %s23_s27 }
   0xb   :  { %p518_p3 = scmp.ne.s32.totalorder %s23_s27, %s517_s6  ;;  %p523_p5 = scmp.lt.s32.totalorder %s517_s6, %s517_s6 }
   0xd   :  { %p524_p6 = por %p523_p5, %p522_p4 }
   0xf   :  { %p525_p7 = pnand %p524_p6, %p518_p3 }
  0x11   :  { %528 = shalt.err (!%p525_p7)
}
  0x12   :  { %s532_s12 = smov 128   ;;  %s533_s13 = smov 8  }
  0x13   :  { %28 = dma.hbm_to_vmem [thread:$0]  %s722_s1, 512, %s23_s27, [#allocation4], %s532_s12, %s532_s12, %s533_s13  }
  0x14   :  { %529 = dma.done.wait [#allocation4], 512  }
  0x15   :  { %530 = vsyncadd [#allocation4], 4294966784  ;;  %v534_v1 = vmov 0.0|0.0   ;;  %vm535_vm0 = vmmov 0   ;;  %v536_v2 = vmov 0.0   ;;  %v43_v3 = vld [vmem:[#allocation3] sm:$0xff] }
  0x16   :  { %447 = vmatprep.subr.bf16.mxu0 %v534_v1  ;;  %374 = vmatprep.mubr.msk.f32.mxu0 %vm535_vm0, %v536_v2  ;;  %v44_v4 = vld [vmem:[#allocation3 + $0x8] sm:$0xff]  ;;  %v45_v5 = vld [vmem:[#allocation3 + $0x10] sm:$0xff]  ;;  %v46_v7 = vld [vmem:[#allocation3 + $0x18] sm:$0xff]  ;;  %vm54_vm1 = vcmask 261120   ;;  %vm316_vm2 = vcmask 7168  }
  0x17   :  { %453 = vmatprep.subr.bf16.mxu1 %v534_v1  ;;  %409 = vmatprep.mubr.msk.f32.mxu1 %vm535_vm0, %v536_v2  ;;  %v448_v6 = vpack.c.bf16 %v44_v4, %v43_v3  ;;  %v129_v8 = vld [vmem:[%s724_s3] sm:$0xff]  ;;  %v130_v9 = vld [vmem:[%s724_s3 + $0x8] sm:$0xff]  ;;  %v131_v10 = vld [vmem:[%s724_s3 + $0x10] sm:$0xff]  ;;  %v451_v12 = vpack.c.bf16 %v46_v7, %v45_v5 }
  0x18   :  { %v132_v11 = vld [vmem:[%s724_s3 + $0x18] sm:$0xff]  ;;  %v454_v13 = vpack.c.bf16 %v130_v9, %v129_v8  ;;  %v133_v15 = vld [vmem:[%s724_s3 + $0x20] sm:$0xff]  ;;  %v134_v16 = vld [vmem:[%s724_s3 + $0x28] sm:$0xff] }
  0x19   :  { %449 = vmatpush3.bf16.msra.mxu0 %v448_v6  ;;  %v457_v14 = vpack.c.bf16 %v132_v11, %v131_v10  ;;  %v42_v17 = vld [vmem:[%s721_s0] sm:$0xff]  ;;  %v460_v18 = vpack.c.bf16 %v134_v16, %v133_v15  ;;  %v135_v19 = vld [vmem:[%s724_s3 + $0x30] sm:$0xff]  ;;  %v136_v20 = vld [vmem:[%s724_s3 + $0x38] sm:$0xff] }
  0x1a   :  { %450 = vmatprep.subr.bf16.mxu0 %v534_v1  ;;  %455 = vmatpush3.bf16.msra.mxu1 %v454_v13  ;;  %v463_v21 = vpack.c.bf16 %v136_v20, %v135_v19  ;;  %v137_v22 = vld [vmem:[%s724_s3 + $0x40] sm:$0xff]  ;;  %v138_v23 = vld [vmem:[%s724_s3 + $0x48] sm:$0xff]  ;;  %v139_v25 = vld [vmem:[%s724_s3 + $0x50] sm:$0xff] }
  0x1b   :  { %456 = vmatprep.subr.bf16.mxu1 %v534_v1  ;;  %v466_v24 = vpack.c.bf16 %v138_v23, %v137_v22  ;;  %v140_v26 = vld [vmem:[%s724_s3 + $0x58] sm:$0xff]  ;;  %v141_v28 = vld [vmem:[%s724_s3 + $0x60] sm:$0xff]  ;;  %v142_v29 = vld [vmem:[%s724_s3 + $0x68] sm:$0xff] }
  0x1c   :  { %v469_v27 = vpack.c.bf16 %v140_v26, %v139_v25  ;;  %v472_v30 = vpack.c.bf16 %v142_v29, %v141_v28  ;;  %v143_v31 = vld [vmem:[%s724_s3 + $0x70] sm:$0xff]  ;;  %v144_v32 = vld [vmem:[%s724_s3 + $0x78] sm:$0xff]  ;;  %v223_v34 = vld [vmem:[%s726_s5] sm:$0xff] }
  0x1d   :  { %452 = vmatpush3.bf16.msra.mxu0 %v451_v12  ;;  %v475_v33 = vpack.c.bf16 %v144_v32, %v143_v31  ;;  %v224_v35 = vld [vmem:[%s726_s5 + $0x8] sm:$0xff]  ;;  %v225_v36 = vld [vmem:[%s726_s5 + $0x10] sm:$0xff]  ;;  %v226_v38 = vld [vmem:[%s726_s5 + $0x18] sm:$0xff] }
  0x1e   :  { %477 = vmatprep.subr.bf16.mxu0 %v534_v1  ;;  %458 = vmatpush3.bf16.msra.mxu1 %v457_v14  ;;  %v478_v37 = vpack.c.bf16 %v224_v35, %v223_v34  ;;  %v481_v39 = vpack.c.bf16 %v226_v38, %v225_v36  ;;  %v227_v40 = vld [vmem:[%s726_s5 + $0x20] sm:$0xff]  ;;  %v228_v41 = vld [vmem:[%s726_s5 + $0x28] sm:$0xff]  ;;  %v229_v43 = vld [vmem:[%s726_s5 + $0x30] sm:$0xff] }
  0x1f   :  { %459 = vmatprep.subr.bf16.mxu1 %v534_v1  ;;  %v484_v42 = vpack.c.bf16 %v228_v41, %v227_v40  ;;  %v230_v44 = vld [vmem:[%s726_s5 + $0x38] sm:$0xff]  ;;  %v231_v46 = vld [vmem:[%s726_s5 + $0x40] sm:$0xff]  ;;  %v232_v47 = vld [vmem:[%s726_s5 + $0x48] sm:$0xff] }
  0x20   :  { %375 = vmatmul.mubr.msk.f32.vlgmr.msra.gmra.mrb[0].mxu0 %vm54_vm1, %v42_v17  ;;  %v487_v45 = vpack.c.bf16 %v230_v44, %v229_v43  ;;  %v490_v48 = vpack.c.bf16 %v232_v47, %v231_v46  ;;  %v233_v49 = vld [vmem:[%s726_s5 + $0x50] sm:$0xff]  ;;  %v234_v50 = vld [vmem:[%s726_s5 + $0x58] sm:$0xff]  ;;  %v235_v52 = vld [vmem:[%s726_s5 + $0x60] sm:$0xff] }
  0x21   :  { %444 = vmatprep.mubr.msk.f32.mxu0 %vm535_vm0, %v536_v2  ;;  %479 = vmatpush3.bf16.msra.mxu0 %v478_v37  ;;  %v493_v51 = vpack.c.bf16 %v234_v50, %v233_v49  ;;  %v236_v53 = vld [vmem:[%s726_s5 + $0x68] sm:$0xff]  ;;  %v323_v55 = vld [vmem:[%s723_s2] ss:$0 sm:$0xff]  ;;  %v237_v60 = vld [vmem:[%s726_s5 + $0x70] sm:$0xff] }
  0x22   :  { %461 = vmatpush3.bf16.msra.mxu1 %v460_v18  ;;  %480 = vmatprep.subr.bf16.mxu0 %v534_v1  ;;  %v496_v54 = vpack.c.bf16 %v236_v53, %v235_v52  ;;  %v238_v61 = vld [vmem:[%s726_s5 + $0x78] sm:$0xff]  ;;  %v325_v63 = vld [vmem:[%s725_s4] ss:$0 sm:$0xff] }
  0x23   :  { %462 = vmatprep.subr.bf16.mxu1 %v534_v1  ;;  %v499_v62 = vpack.c.bf16 %v238_v61, %v237_v60  ;;  %v326_v4 = vld [vmem:[#allocation2] ss:$0 sm:$0xff] }
  0x25   :  { %482 = vmatpush3.bf16.msra.mxu0 %v481_v39 }
  0x26   :  { %464 = vmatpush3.bf16.msra.mxu1 %v463_v21  ;;  %483 = vmatprep.subr.bf16.mxu0 %v534_v1 }
  0x27   :  { %465 = vmatprep.subr.bf16.mxu1 %v534_v1 }
  0x29   :  { %485 = vmatpush3.bf16.msra.mxu0 %v484_v42 }
  0x2a   :  { %467 = vmatpush3.bf16.msra.mxu1 %v466_v24  ;;  %486 = vmatprep.subr.bf16.mxu0 %v534_v1 }
  0x2b   :  { %468 = vmatprep.subr.bf16.mxu1 %v534_v1 }
  0x2d   :  { %488 = vmatpush3.bf16.msra.mxu0 %v487_v45 }
  0x2e   :  { %470 = vmatpush3.bf16.msra.mxu1 %v469_v27  ;;  %489 = vmatprep.subr.bf16.mxu0 %v534_v1 }
  0x2f   :  { %471 = vmatprep.subr.bf16.mxu1 %v534_v1 }
  0x31   :  { %491 = vmatpush3.bf16.msra.mxu0 %v490_v48 }
  0x32   :  { %473 = vmatpush3.bf16.msra.mxu1 %v472_v30  ;;  %492 = vmatprep.subr.bf16.mxu0 %v534_v1 }
  0x33   :  { %474 = vmatprep.subr.bf16.mxu1 %v534_v1 }
  0x35   :  { %494 = vmatpush3.bf16.msra.mxu0 %v493_v51 }
  0x36   :  { %476 = vmatpush3.bf16.msra.mxu1 %v475_v33  ;;  %495 = vmatprep.subr.bf16.mxu0 %v534_v1 }
  0x39   :  { %497 = vmatpush3.bf16.msra.mxu0 %v496_v54 }
  0x3a   :  { %498 = vmatprep.subr.bf16.mxu0 %v534_v1 }
  0x3d   :  { %500 = vmatpush3.bf16.msra.mxu0 %v499_v62 }
  0xf3   :  { %v124_v56 = vpop.f32.mrb[0].mxu0 }
  0xf4   :  { %v125_v57 = vadd.f32 %v323_v55, %v124_v56  ;;  %v376_v58 = vpop.f32.mrb[1].mxu0 }
  0xf6   :  { %v128_v59 = vmax.f32 %v125_v57, 0.0 }
  0xf8   :  { %410 = vmatmul.mubr.f32.vlgmr.msra.gmra.mrb[0].mxu1 %v128_v59 }
 0x1cb   :  { %v218_v0 = vpop.f32.mrb[0].mxu1 }
 0x1cc   :  { %v219_v1 = vadd.f32 %v325_v63, %v218_v0  ;;  %v411_v2 = vpop.f32.mrb[1].mxu1 }
 0x1ce   :  { %v222_v3 = vmax.f32 %v219_v1, 0.0 }
 0x1d0   :  { %445 = vmatmul.mubr.f32.vlgmr.msra.gmra.mrb[2].mxu0 %v222_v3 }
 0x2a3   :  { %v312_v5 = vpop.f32.mrb[2].mxu0 }
 0x2a4   :  { %v313_v6 = vadd.f32 %v326_v4, %v312_v5  ;;  %v446_v7 = vpop.f32.mrb[3].mxu0 }
 0x2a6   :  { %317 = vst.msk [vmem:[%s728_s7] sm:$0xff] %vm316_vm2, %v313_v6 }
 0x2a7   :  { %322 = vsyncpa [#allocation4], 1 }

</bundles_post_ra>
